<compile_context>
chip_gen: v7x
topology: tpu7x:2x2x1
jax: 0.10.0
libtpu: 0.0.40
codegen_flags: <defaults>
</compile_context>

<pallas_src>
import functools

import jax
import jax.numpy as jnp
from jax.experimental import pallas as pl
from jax.experimental.pallas import tpu as pltpu


_LANE = 128
_MONOLITHIC_MAX_NP = 1024  # above this padded node count, use the tiled path


# ----------------------------------------------------------------------------
# Kernels
# ----------------------------------------------------------------------------
def _gcn_fused_kernel(a_ref, x_ref, w1_ref, b1_ref, w2_ref, b2_ref, o_ref, *,
                      agg_first_l1, agg_first_l2):
    """Fused 2-layer GCN: out = A @ relu(A @ X @ W1 + b1) @ W2 + b2.

    All matmul operands bf16, f32 accumulation on the MXU.  Padded rows of the
    hidden activation are relu(b1) != 0 but are killed by A_hat's zero padded
    columns in the second aggregation (see invariant note at top of file).
    """
    a = a_ref[...]          # (Np, Np)   bf16
    x = x_ref[...]          # (Np, C1p)  bf16
    w1 = w1_ref[...]        # (C1p, C2p) bf16
    w2 = w2_ref[...]        # (C2p, C3p) bf16

    def gcn_layer(feat_bf16, w_bf16, b_f32, agg_first):
        if agg_first:
            # (A @ X) @ W  -- N^2 matmul contracts over the narrower C_in.
            ax = jnp.dot(a, feat_bf16, preferred_element_type=jnp.float32)
            y = jnp.dot(ax.astype(jnp.bfloat16), w_bf16,
                        preferred_element_type=jnp.float32)
        else:
            # A @ (X @ W)  -- N^2 matmul contracts over the narrower C_out.
            xw = jnp.dot(feat_bf16, w_bf16, preferred_element_type=jnp.float32)
            y = jnp.dot(a, xw.astype(jnp.bfloat16),
                        preferred_element_type=jnp.float32)
        return y + b_f32    # f32 bias add on the VPU

    h = jnp.maximum(gcn_layer(x, w1, b1_ref[...], agg_first_l1), 0.0)
    out = gcn_layer(h.astype(jnp.bfloat16), w2, b2_ref[...], agg_first_l2)
    o_ref[...] = out.astype(o_ref.dtype)


def _gcn_layer_tiled_kernel(a_ref, x_ref, w_ref, b_ref, o_ref, *, apply_relu):
    """One GCN layer for one row stripe: o = [relu](A_stripe @ X @ W + b).

    a_ref is the streamed (TM, Np) stripe; x_ref/w_ref/b_ref are resident.
    Aggregation-first keeps the per-stripe work proportional to the stripe.
    """
    ax = jnp.dot(a_ref[...], x_ref[...], preferred_element_type=jnp.float32)
    y = jnp.dot(ax.astype(jnp.bfloat16), w_ref[...],
                preferred_element_type=jnp.float32)
    y = y + b_ref[...]
    if apply_relu:
        y = jnp.maximum(y, 0.0)
    o_ref[...] = y.astype(o_ref.dtype)


# ----------------------------------------------------------------------------
# Wrapper helpers
# ----------------------------------------------------------------------------
def _round_up(v, m):
    return (v + m - 1) // m * m


def _pad_cast(x, rows, cols, dtype):
    """Pad-with-zeros and cast in a single pass (no pad-then-astype)."""
    out = jnp.zeros((rows, cols), dtype)
    return out.at[: x.shape[0], : x.shape[1]].set(x.astype(dtype))


def _resident_spec(block_shape):
    """Whole-array block, constant index_map, single-buffered (Buffered(1))."""
    return pl.BlockSpec(block_shape, lambda i: (0, 0),
                        pipeline_mode=pl.Buffered(1))


def _vmem_limit_bytes(estimate_bytes):
    """Explicit scoped-VMEM budget derived from block sizes + physical VMEM."""
    try:
        phys = int(pltpu.get_tpu_info().vmem_capacity_bytes)
    except Exception:  # pragma: no cover - conservative fallback (v7x-safe)
        phys = 64 * 1024 * 1024
    cap = (phys * 3) // 4                       # leave compiler headroom
    want = max(32 * 1024 * 1024, 2 * int(estimate_bytes) + 4 * 1024 * 1024)
    return int(min(cap, want))


def _pick_tile_m(n_p):
    for tm in (512, 256, 128):
        if n_p % tm == 0:
            return tm
    return 128


# ----------------------------------------------------------------------------
# pallas_call wrappers
# ----------------------------------------------------------------------------
def _gcn_monolithic_call(a_p, x_p, w1_p, b1_p, w2_p, b2_p, *,
                         agg_first_l1, agg_first_l2):
    n_p = a_p.shape[0]
    c_in_p = x_p.shape[1]
    c_hid_p = w1_p.shape[1]
    c_out_p = w2_p.shape[1]

    kernel = functools.partial(_gcn_fused_kernel,
                               agg_first_l1=agg_first_l1,
                               agg_first_l2=agg_first_l2)

    vmem_est = (n_p * n_p * 2                      # A_hat bf16 (single-buffered)
                + n_p * c_in_p * 2                 # X bf16
                + c_in_p * c_hid_p * 2 + c_hid_p * c_out_p * 2   # W1, W2 bf16
                + (c_hid_p + c_out_p) * 4          # biases f32
                + 2 * n_p * c_out_p * 4            # output f32 (double-buffered)
                + n_p * (c_hid_p + c_out_p) * 6)   # in-kernel f32/bf16 temps

    return pl.pallas_call(
        kernel,
        out_shape=jax.ShapeDtypeStruct((n_p, c_out_p), jnp.float32),
        grid=(1,),
        in_specs=[
            _resident_spec((n_p, n_p)),        # A_hat (bf16)
            _resident_spec((n_p, c_in_p)),     # X     (bf16)
            _resident_spec((c_in_p, c_hid_p)),  # W1   (bf16)
            _resident_spec((1, c_hid_p)),      # b1    (f32)
            _resident_spec((c_hid_p, c_out_p)),  # W2  (bf16)
            _resident_spec((1, c_out_p)),      # b2    (f32)
        ],
        out_specs=pl.BlockSpec((n_p, c_out_p), lambda i: (0, 0)),
        compiler_params=pltpu.CompilerParams(
            dimension_semantics=("arbitrary",),
            vmem_limit_bytes=_vmem_limit_bytes(vmem_est),
        ),
    )(a_p, x_p, w1_p, b1_p, w2_p, b2_p)


def _gcn_layer_tiled_call(a_p, x_p, w_p, b_p, *, apply_relu, out_dtype,
                          tile_m=None):
    n_p = a_p.shape[0]
    c_in_p, c_out_p = w_p.shape
    tm = tile_m if tile_m is not None else _pick_tile_m(n_p)
    assert n_p % tm == 0
    grid = (n_p // tm,)

    kernel = functools.partial(_gcn_layer_tiled_kernel, apply_relu=apply_relu)

    out_bytes = jnp.dtype(out_dtype).itemsize
    vmem_est = (2 * tm * n_p * 2                   # streamed A stripe, 2-deep
                + n_p * c_in_p * 2                 # resident X bf16
                + c_in_p * c_out_p * 2 + c_out_p * 4   # resident W, b
                + 2 * tm * c_out_p * out_bytes     # output block, 2-deep
                + tm * (c_in_p + c_out_p) * 6)     # in-kernel temps

    return pl.pallas_call(
        kernel,
        out_shape=jax.ShapeDtypeStruct((n_p, c_out_p), out_dtype),
        grid=grid,
        in_specs=[
            # Streamed A stripe: default double-buffering so its DMA overlaps
            # the matmuls of the previous stripe.
            pl.BlockSpec((tm, n_p), lambda i: (i, 0)),
            # Resident operands: constant index_map + single buffer.
            _resident_spec((n_p, c_in_p)),
            _resident_spec((c_in_p, c_out_p)),
            _resident_spec((1, c_out_p)),
        ],
        out_specs=pl.BlockSpec((tm, c_out_p), lambda i: (i, 0)),
        compiler_params=pltpu.CompilerParams(
            # Row stripes are independent -> megacore sharding on v7x.
            dimension_semantics=("parallel",),
            vmem_limit_bytes=_vmem_limit_bytes(vmem_est),
        ),
    )(a_p, x_p, w_p, b_p)


# ----------------------------------------------------------------------------
# Public forward
# ----------------------------------------------------------------------------
def gcn_forward(params, x, edge_index, *, force_tiled=False, tile_m=None):
    n, c_in = x.shape
    c_hid = params["w1"].shape[1]
    c_out = params["w2"].shape[1]

    n_p = _round_up(n, _LANE)
    c_in_p = _round_up(c_in, _LANE)
    c_hid_p = _round_up(c_hid, _LANE)
    c_out_p = _round_up(c_out, _LANE)

    # Build the normalized adjacency directly into its padded buffer and cast
    # to bf16 exactly once (no separate pad / astype HBM passes).
    a_p = build_norm_adj_padded(edge_index, n, n_p, out_dtype=jnp.bfloat16)

    x_p = _pad_cast(x, n_p, c_in_p, jnp.bfloat16)
    w1_p = _pad_cast(params["w1"], c_in_p, c_hid_p, jnp.bfloat16)
    w2_p = _pad_cast(params["w2"], c_hid_p, c_out_p, jnp.bfloat16)
    b1_p = _pad_cast(params["b1"].reshape(1, -1), 1, c_hid_p, jnp.float32)
    b2_p = _pad_cast(params["b2"].reshape(1, -1), 1, c_out_p, jnp.float32)

    use_tiled = force_tiled or n_p > _MONOLITHIC_MAX_NP
    if not use_tiled:
        # Small-N regime: one fused kernel, A read once, no per-step overhead.
        out_p = _gcn_monolithic_call(
            a_p, x_p, w1_p, b1_p, w2_p, b2_p,
            # Association from ORIGINAL widths so the N^2 matmul contracts
            # over min(C_in, C_out).
            agg_first_l1=(c_in <= c_hid),
            agg_first_l2=(c_hid <= c_out),
        )
    else:
        # Large-N regime: stream A row stripes; hidden activation does one
        # cheap bf16 HBM round-trip between the two layer calls.
        h_p = _gcn_layer_tiled_call(a_p, x_p, w1_p, b1_p,
                                    apply_relu=True, out_dtype=jnp.bfloat16,
                                    tile_m=tile_m)
        out_p = _gcn_layer_tiled_call(a_p, h_p, w2_p, b2_p,
                                      apply_relu=False, out_dtype=jnp.float32,
                                      tile_m=tile_m)

    # Slice padding back off (stores were lane-dense in-kernel).
    return out_p[:n, :c_out]


# ----------------------------------------------------------------------------
# Graph / parameter glue (plain JAX, runs once)
# ----------------------------------------------------------------------------
def build_norm_adj_padded(edge_index, num_nodes, n_pad, out_dtype=jnp.bfloat16):
    """D^{-1/2}(A + I)D^{-1/2}, scattered directly into an (n_pad, n_pad) buffer.

    Duplicate edges accumulate (PyG scatter_add semantics); self-loops are only
    added where missing (add_remaining_self_loops) and only for real nodes, so
    padded rows/columns stay exactly zero (required padded-row invariant).
    """
    src = edge_index[0]
    dst = edge_index[1]
    adj = jnp.zeros((n_pad, n_pad), jnp.float32)
    adj = adj.at[dst, src].add(1.0)                 # A[dst, src] += 1
    diag = jnp.diagonal(adj)
    is_real = jnp.arange(n_pad) < num_nodes
    adj = adj + jnp.diag(jnp.where(is_real & (diag == 0.0), 1.0, 0.0))
    deg = adj.sum(axis=1)
    dinv = jnp.where(deg > 0, jax.lax.rsqrt(deg), 0.0)
    return (dinv[:, None] * adj * dinv[None, :]).astype(out_dtype)


def glorot(key, shape):
    fan_in, fan_out = shape
    bound = jnp.sqrt(6.0 / (fan_in + fan_out))
    return jax.random.uniform(key, shape, jnp.float32, -bound, bound)


def init_gcn_params(key, in_channels, hidden_channels, out_channels):
    k1, k2 = jax.random.split(key)
    return {
        "w1": glorot(k1, (in_channels, hidden_channels)),
        "b1": jnp.zeros((hidden_channels,), jnp.float32),
        "w2": glorot(k2, (hidden_channels, out_channels)),
        "b2": jnp.zeros((out_channels,), jnp.float32),
    }


def gcn_reference(params, x, edge_index):
    # Pure-JAX f32 reference of the same forward pass (unpadded).
    n = x.shape[0]
    a_hat = build_norm_adj_padded(edge_index, n, n, out_dtype=jnp.float32)
    h = jnp.maximum(a_hat @ (x @ params["w1"]) + params["b1"], 0.0)
    return a_hat @ (h @ params["w2"]) + params["b2"]


if __name__ == "__main__":
    key = jax.random.PRNGKey(0)
    kx, kp, kx2, kp2 = jax.random.split(key, 4)

    in_channels, hidden_channels, out_channels = 8, 32, 8

    # ---- Test 1: small graph -> monolithic fused path -----------------------
    num_nodes = 16
    x = jax.random.normal(kx, (num_nodes, in_channels), jnp.float32)
    idx = jnp.arange(num_nodes, dtype=jnp.int32)
    nxt = (idx + 1) % num_nodes
    edge_index = jnp.stack(
        [jnp.concatenate([idx, nxt]), jnp.concatenate([nxt, idx])], axis=0)
    params = init_gcn_params(kp, in_channels, hidden_channels, out_channels)

    out = gcn_forward(params, x, edge_index)
    jax.block_until_ready(out)
    assert out.shape == (num_nodes, out_channels)
    assert out.dtype == jnp.float32
    ref = gcn_reference(params, x, edge_index)
    err = float(jnp.max(jnp.abs(out - ref)))
    assert err < 0.1, f"monolithic path: max abs error too large: {err}"

    # ---- Test 2: larger graph -> forced row-tiled streamed path -------------
    # Ring graph + a few pre-existing self-loops + a few duplicate edges to
    # exercise the scatter-add / add_remaining_self_loops semantics.
    num_nodes2 = 200                      # n_p = 256, tile_m = 128 -> 2 stripes
    x2 = jax.random.normal(kx2, (num_nodes2, in_channels), jnp.float32)
    idx2 = jnp.arange(num_nodes2, dtype=jnp.int32)
    nxt2 = (idx2 + 1) % num_nodes2
    loops = jnp.arange(5, dtype=jnp.int32)
    dups = jnp.arange(3, dtype=jnp.int32)
    edge_index2 = jnp.stack([
        jnp.concatenate([idx2, nxt2, loops, dups]),
        jnp.concatenate([nxt2, idx2, loops, (dups + 1) % num_nodes2]),
    ], axis=0)
    params2 = init_gcn_params(kp2, in_channels, hidden_channels, out_channels)

    out2 = gcn_forward(params2, x2, edge_index2, force_tiled=True, tile_m=128)
    jax.block_until_ready(out2)
    assert out2.shape == (num_nodes2, out_channels)
    ref2 = gcn_reference(params2, x2, edge_index2)
    err2 = float(jnp.max(jnp.abs(out2 - ref2)))
    assert err2 < 0.1, f"tiled path: max abs error too large: {err2}"

    print("KERNEL_OK")
</pallas_src>

<mosaic_0001>
module attributes {stable_mosaic.version = 11 : i64} {
  func.func @_gcn_fused_kernel(%arg0: i32, %arg1: memref<128x128xbf16, #tpu.memory_space<vmem>>, %arg2: memref<128x128xbf16, #tpu.memory_space<vmem>>, %arg3: memref<128x128xbf16, #tpu.memory_space<vmem>>, %arg4: memref<1x128xf32, #tpu.memory_space<vmem>>, %arg5: memref<128x128xbf16, #tpu.memory_space<vmem>>, %arg6: memref<1x128xf32, #tpu.memory_space<vmem>>, %arg7: memref<128x128xf32, #tpu.memory_space<vmem>>) attributes {dimension_semantics = [#tpu.dimension_semantics<arbitrary>], iteration_bounds = array<i64: 1>, scalar_prefetch = 0 : i64, scratch_operands = 0 : i64, tpu.core_type = #tpu.core_type<tc>, window_params = [{pipeline_mode = #tpu.pipeline_mode<synchronous>, transform_indices = @transform_0, window_bounds = array<i64: 128, 128>}, {pipeline_mode = #tpu.pipeline_mode<synchronous>, transform_indices = @transform_1, window_bounds = array<i64: 128, 128>}, {pipeline_mode = #tpu.pipeline_mode<synchronous>, transform_indices = @transform_2, window_bounds = array<i64: 128, 128>}, {pipeline_mode = #tpu.pipeline_mode<synchronous>, transform_indices = @transform_3, window_bounds = array<i64: 1, 128>}, {pipeline_mode = #tpu.pipeline_mode<synchronous>, transform_indices = @transform_4, window_bounds = array<i64: 128, 128>}, {pipeline_mode = #tpu.pipeline_mode<synchronous>, transform_indices = @transform_5, window_bounds = array<i64: 1, 128>}, {pipeline_mode = #tpu.pipeline_mode<synchronous>, transform_indices = @transform_6, window_bounds = array<i64: 128, 128>}]} {
    %c0 = arith.constant 0 : index
    %c0_0 = arith.constant 0 : index
    %0 = vector.load %arg1[%c0, %c0_0] : memref<128x128xbf16, #tpu.memory_space<vmem>>, vector<128x128xbf16>
    %c0_1 = arith.constant 0 : index
    %c0_2 = arith.constant 0 : index
    %1 = vector.load %arg2[%c0_1, %c0_2] : memref<128x128xbf16, #tpu.memory_space<vmem>>, vector<128x128xbf16>
    %c0_3 = arith.constant 0 : index
    %c0_4 = arith.constant 0 : index
    %2 = vector.load %arg3[%c0_3, %c0_4] : memref<128x128xbf16, #tpu.memory_space<vmem>>, vector<128x128xbf16>
    %c0_5 = arith.constant 0 : index
    %c0_6 = arith.constant 0 : index
    %3 = vector.load %arg5[%c0_5, %c0_6] : memref<128x128xbf16, #tpu.memory_space<vmem>>, vector<128x128xbf16>
    %c0_7 = arith.constant 0 : index
    %c0_8 = arith.constant 0 : index
    %4 = vector.load %arg4[%c0_7, %c0_8] : memref<1x128xf32, #tpu.memory_space<vmem>>, vector<1x128xf32>
    %cst = arith.constant dense<0.000000e+00> : vector<128x128xf32>
    %5 = tpu.matmul %0, %1, %cst {dimension_numbers = #tpu.dot_dimension_numbers<[1], [0], [0], [1], [0, 0, 1, 1], [], []>} : vector<128x128xbf16>, vector<128x128xbf16>, vector<128x128xf32> -> vector<128x128xf32>
    %6 = arith.truncf %5 : vector<128x128xf32> to vector<128x128xbf16>
    %cst_9 = arith.constant dense<0.000000e+00> : vector<128x128xf32>
    %7 = tpu.matmul %6, %2, %cst_9 {dimension_numbers = #tpu.dot_dimension_numbers<[1], [0], [0], [1], [0, 0, 1, 1], [], []>} : vector<128x128xbf16>, vector<128x128xbf16>, vector<128x128xf32> -> vector<128x128xf32>
    %8 = vector.broadcast %4 : vector<1x128xf32> to vector<128x128xf32>
    %9 = arith.addf %7, %8 : vector<128x128xf32>
    %cst_10 = arith.constant 0.000000e+00 : f32
    %10 = vector.broadcast %cst_10 : f32 to vector<128x128xf32>
    %11 = arith.maximumf %9, %10 : vector<128x128xf32>
    %12 = arith.truncf %11 : vector<128x128xf32> to vector<128x128xbf16>
    %c0_11 = arith.constant 0 : index
    %c0_12 = arith.constant 0 : index
    %13 = vector.load %arg6[%c0_11, %c0_12] : memref<1x128xf32, #tpu.memory_space<vmem>>, vector<1x128xf32>
    %cst_13 = arith.constant dense<0.000000e+00> : vector<128x128xf32>
    %14 = tpu.matmul %12, %3, %cst_13 {dimension_numbers = #tpu.dot_dimension_numbers<[1], [0], [0], [1], [0, 0, 1, 1], [], []>} : vector<128x128xbf16>, vector<128x128xbf16>, vector<128x128xf32> -> vector<128x128xf32>
    %15 = arith.truncf %14 : vector<128x128xf32> to vector<128x128xbf16>
    %cst_14 = arith.constant dense<0.000000e+00> : vector<128x128xf32>
    %16 = tpu.matmul %0, %15, %cst_14 {dimension_numbers = #tpu.dot_dimension_numbers<[1], [0], [0], [1], [0, 0, 1, 1], [], []>} : vector<128x128xbf16>, vector<128x128xbf16>, vector<128x128xf32> -> vector<128x128xf32>
    %17 = vector.broadcast %13 : vector<1x128xf32> to vector<128x128xf32>
    %18 = arith.addf %16, %17 : vector<128x128xf32>
    %c0_15 = arith.constant 0 : index
    %c0_16 = arith.constant 0 : index
    %19 = vector.load %arg7[%c0_15, %c0_16] : memref<128x128xf32, #tpu.memory_space<vmem>>, vector<128x128xf32>
    tpu.vector_store %arg7[%c0_15, %c0_16], %18 {strides = array<i32>} : memref<128x128xf32, #tpu.memory_space<vmem>>, vector<128x128xf32>,
    return
  }
  func.func @transform_0(%arg0: i32) -> (i32, i32) {
    %c0_i32 = arith.constant 0 : i32
    %c0_i32_0 = arith.constant 0 : i32
    %c0_i32_1 = arith.constant 0 : i32
    return %c0_i32, %c0_i32_0 : i32, i32
  }
  func.func @transform_1(%arg0: i32) -> (i32, i32) {
    %c0_i32 = arith.constant 0 : i32
    %c0_i32_0 = arith.constant 0 : i32
    %c0_i32_1 = arith.constant 0 : i32
    return %c0_i32, %c0_i32_0 : i32, i32
  }
  func.func @transform_2(%arg0: i32) -> (i32, i32) {
    %c0_i32 = arith.constant 0 : i32
    %c0_i32_0 = arith.constant 0 : i32
    %c0_i32_1 = arith.constant 0 : i32
    return %c0_i32, %c0_i32_0 : i32, i32
  }
  func.func @transform_3(%arg0: i32) -> (i32, i32) {
    %c0_i32 = arith.constant 0 : i32
    %c0_i32_0 = arith.constant 0 : i32
    %c0_i32_1 = arith.constant 0 : i32
    return %c0_i32, %c0_i32_0 : i32, i32
  }
  func.func @transform_4(%arg0: i32) -> (i32, i32) {
    %c0_i32 = arith.constant 0 : i32
    %c0_i32_0 = arith.constant 0 : i32
    %c0_i32_1 = arith.constant 0 : i32
    return %c0_i32, %c0_i32_0 : i32, i32
  }
  func.func @transform_5(%arg0: i32) -> (i32, i32) {
    %c0_i32 = arith.constant 0 : i32
    %c0_i32_0 = arith.constant 0 : i32
    %c0_i32_1 = arith.constant 0 : i32
    return %c0_i32, %c0_i32_0 : i32, i32
  }
  func.func @transform_6(%arg0: i32) -> (i32, i32) {
    %c0_i32 = arith.constant 0 : i32
    %c0_i32_0 = arith.constant 0 : i32
    %c0_i32_1 = arith.constant 0 : i32
    return %c0_i32, %c0_i32_0 : i32, i32
  }
}

</mosaic_0001>

<bundles_post_ra>
// kernel: tpu_custom_call.1
= control target key start
LH: loop header
LB: loop body
LE: loop exit
PB: predicated region body
PF: predicated region fallthrough
CT: control target
= control target key end

     0   :  { %11 = vsyncpa [#allocation3], 0  ;;  %s1366_s0 = inlined_call_operand.hbm [shape: bf16[128,128], index: 0, kind: input, shape index: {}]   ;;  %s1367_s1 = inlined_call_operand.hbm [shape: bf16[128,128], index: 1, kind: input, shape index: {}]   ;;  %s1368_s2 = inlined_call_operand.hbm [shape: bf16[128,128], index: 2, kind: input, shape index: {}]   ;;  %s1369_s3 = inlined_call_operand.vmem [shape: f32[1,128], index: 3, kind: input, shape index: {}]   ;;  %s1370_s4 = inlined_call_operand.hbm [shape: bf16[128,128], index: 4, kind: input, shape index: {}]   ;;  %s1371_s5 = inlined_call_operand.vmem [shape: f32[1,128], index: 5, kind: input, shape index: {}]   ;;  %s1372_s6 = inlined_call_operand.hbm [shape: f32[128,128], index: 6, kind: output, shape index: {}]  }
   0x1   :  { %12 = vsyncpa [#allocation6], 0 }
   0x2   :  { %13 = vsyncpa [#allocation9], 0 }
   0x3   :  { %14 = vsyncpa [#allocation4], 0  ;;  %s1198_s21 = smov [#allocation5]   ;;  %s1199_s23 = smov [#allocation2]  }
   0x4   :  { %s32_s22 = sshll.u32 %s1198_s21, 4  ;;  %s20_s24 = sshll.u32 %s1199_s23, 4  ;;  %s33_s22 = int_to_ptr.vmem [resolvable:$true] %s32_s22  ;;  %s1242_s24 = int_to_ptr.vmem [resolvable:$true] %s20_s24 }
   0x5   :  { %s1080_s27 = scalar_lea.hbm %s1367_s1, 1024 }
   0x6   :  { %p1081_p0 = scmp.ne.s32.totalorder %s1367_s1, %s1080_s27  ;;  %p1084_p1 = scmp.lt.u32.totalorder %s1080_s27, %s1367_s1 }
   0x8   :  { %p1086_p2 = pnand %p1084_p1, %p1081_p0 }
   0xa   :  { %1089 = shalt.err (!%p1086_p2)
}
   0xb   :  { %s1090_s8 = scalar_lea.vmem %s33_s22, 1024  ;;  %p1095_p4 = scmp.lt.s32.totalorder %s33_s22, %s33_s22 }
   0xc   :  { %p1091_p3 = scmp.ne.s32.totalorder %s33_s22, %s1090_s8  ;;  %p1096_p5 = scmp.lt.s32.totalorder %s1090_s8, %s1090_s8 }
   0xe   :  { %p1097_p6 = por %p1096_p5, %p1095_p4 }
  0x10   :  { %p1098_p7 = pnand %p1097_p6, %p1091_p3 }
  0x12   :  { %1101 = shalt.err (!%p1098_p7)
}
  0x13   :  { %s1200_s9 = smov 64   ;;  %s1201_s10 = smov 4  }
  0x14   :  { %38 = dma.hbm_to_vmem [thread:$0]  %s1367_s1, 1024, %s33_s22, [#allocation6], %s1200_s9, %s1200_s9, %s1201_s10  }
  0x15   :  { %s1102_s15 = scalar_lea.hbm %s1366_s0, 1024 }
  0x16   :  { %p1103_p8 = scmp.ne.s32.totalorder %s1366_s0, %s1102_s15  ;;  %p1106_p9 = scmp.lt.u32.totalorder %s1102_s15, %s1366_s0 }
  0x18   :  { %p1108_p10 = pnand %p1106_p9, %p1103_p8 }
  0x1a   :  { %1111 = shalt.err (!%p1108_p10)
}
  0x1b   :  { %s1112_s20 = scalar_lea.vmem %s1242_s24, 1024  ;;  %p1117_p12 = scmp.lt.s32.totalorder %s1242_s24, %s1242_s24 }
  0x1c   :  { %p1113_p11 = scmp.ne.s32.totalorder %s1242_s24, %s1112_s20  ;;  %p1118_p13 = scmp.lt.s32.totalorder %s1112_s20, %s1112_s20 }
  0x1e   :  { %p1119_p0 = por %p1118_p13, %p1117_p12 }
  0x20   :  { %p1120_p1 = pnand %p1119_p0, %p1113_p11 }
  0x22   :  { %1123 = shalt.err (!%p1120_p1)
}
  0x23   :  { %26 = dma.hbm_to_vmem [thread:$0]  %s1366_s0, 1024, %s1242_s24, [#allocation3], %s1200_s9, %s1200_s9, %s1201_s10  }
  0x24   :  { %s1202_s22 = smov [#allocation7]   ;;  %s1203_s25 = smov [#allocation8]  }
  0x25   :  { %s44_s23 = sshll.u32 %s1202_s22, 4  ;;  %s58_s26 = sshll.u32 %s1203_s25, 4  ;;  %s45_s23 = int_to_ptr.vmem [resolvable:$true] %s44_s23  ;;  %s1279_s26 = int_to_ptr.vmem [resolvable:$true] %s58_s26 }
  0x26   :  { %s1124_s29 = scalar_lea.hbm %s1368_s2, 1024 }
  0x27   :  { %p1125_p2 = scmp.ne.s32.totalorder %s1368_s2, %s1124_s29  ;;  %p1128_p3 = scmp.lt.u32.totalorder %s1124_s29, %s1368_s2 }
  0x29   :  { %p1130_p4 = pnand %p1128_p3, %p1125_p2 }
  0x2b   :  { %1133 = shalt.err (!%p1130_p4)
}
  0x2c   :  { %s1134_s0 = scalar_lea.vmem %s45_s23, 1024  ;;  %p1139_p6 = scmp.lt.s32.totalorder %s45_s23, %s45_s23 }
  0x2d   :  { %p1135_p5 = scmp.ne.s32.totalorder %s45_s23, %s1134_s0  ;;  %p1140_p7 = scmp.lt.s32.totalorder %s1134_s0, %s1134_s0 }
  0x2f   :  { %p1141_p8 = por %p1140_p7, %p1139_p6 }
  0x31   :  { %p1142_p9 = pnand %p1141_p8, %p1135_p5 }
  0x33   :  { %1145 = shalt.err (!%p1142_p9)
}
  0x34   :  { %50 = dma.hbm_to_vmem [thread:$0]  %s1368_s2, 1024, %s45_s23, [#allocation6], %s1200_s9, %s1200_s9, %s1201_s10  }
  0x35   :  { %s1146_s15 = scalar_lea.hbm %s1370_s4, 1024 }
  0x36   :  { %p1147_p10 = scmp.ne.s32.totalorder %s1370_s4, %s1146_s15  ;;  %p1150_p11 = scmp.lt.u32.totalorder %s1146_s15, %s1370_s4 }
  0x38   :  { %p1152_p12 = pnand %p1150_p11, %p1147_p10 }
  0x3a   :  { %1155 = shalt.err (!%p1152_p12)
}
  0x3b   :  { %s1156_s20 = scalar_lea.vmem %s1279_s26, 1024  ;;  %p1161_p0 = scmp.lt.s32.totalorder %s1279_s26, %s1279_s26 }
  0x3c   :  { %p1157_p13 = scmp.ne.s32.totalorder %s1279_s26, %s1156_s20  ;;  %p1162_p1 = scmp.lt.s32.totalorder %s1156_s20, %s1156_s20 }
  0x3e   :  { %p1163_p2 = por %p1162_p1, %p1161_p0 }
  0x40   :  { %p1164_p3 = pnand %p1163_p2, %p1157_p13 }
  0x42   :  { %1167 = shalt.err (!%p1164_p3)
}
  0x43   :  { %64 = dma.hbm_to_vmem [thread:$0]  %s1370_s4, 1024, %s1279_s26, [#allocation9], %s1200_s9, %s1200_s9, %s1201_s10  }
  0x44   :  { %1190 = dma.done.wait [#allocation3], 1024  }
  0x45   :  { %1191 = vsyncadd [#allocation3], 4294966272 }
  0x46   :  { %1192 = dma.done.wait [#allocation6], 2048  }
  0x47   :  { %1193 = vsyncadd [#allocation6], 4294965248 }
  0x48   :  { %1194 = dma.done.wait [#allocation9], 1024  }
  0x49   :  { %1195 = vsyncadd [#allocation9], 4294966272  ;;  %v1048_v0 = vld [vmem:[#allocation5] sm:$0xff]   ;;  %v1049_v1 = vld [vmem:[#allocation5 + $0x8] sm:$0xff]  }
  0x4a   :  { %911 = vmatprep.subr.bf16.mxu0 %v1048_v0  ;;  %v1050_v2 = vld [vmem:[#allocation5 + $0x10] sm:$0xff]   ;;  %v1051_v3 = vld [vmem:[#allocation5 + $0x18] sm:$0xff]   ;;  %v1316_v4 = vld [vmem:[#allocation2] sm:$0xff]  }
  0x4b   :  { %912 = vmatpush3.bf16.msra.mxu0 %v1048_v0  ;;  %927 = vmatprep.mubr.bf16.mxu0 %v1316_v4  ;;  %v1052_v5 = vld [vmem:[#allocation5 + $0x20] sm:$0xff]   ;;  %v1053_v6 = vld [vmem:[#allocation5 + $0x28] sm:$0xff]   ;;  %v1054_v9 = vld [vmem:[#allocation5 + $0x30] sm:$0xff]  }
  0x4c   :  { %913 = vmatprep.subr.bf16.mxu0 %v1049_v1  ;;  %v1064_v7 = vld [vmem:[#allocation7] sm:$0xff]   ;;  %v1065_v8 = vld [vmem:[#allocation7 + $0x8] sm:$0xff]   ;;  %v1066_v10 = vld [vmem:[#allocation7 + $0x10] sm:$0xff]  }
  0x4d   :  { %943 = vmatprep.subr.bf16.mxu1 %v1064_v7  ;;  %v1055_v11 = vld [vmem:[#allocation5 + $0x38] sm:$0xff]   ;;  %v1068_v13 = vld [vmem:[#allocation7 + $0x20] sm:$0xff]   ;;  %v1319_v14 = vld [vmem:[#allocation2 + $0x8] sm:$0xff]  }
  0x4e   :  { %944 = vmatpush3.bf16.msra.mxu1 %v1064_v7  ;;  %v1067_v12 = vld [vmem:[#allocation7 + $0x18] sm:$0xff]   ;;  %v1321_v15 = vld [vmem:[#allocation2 + $0x10] sm:$0xff]   ;;  %v1069_v16 = vld [vmem:[#allocation7 + $0x28] sm:$0xff]  }
  0x4f   :  { %914 = vmatpush3.bf16.msra.mxu0 %v1049_v1  ;;  %945 = vmatprep.subr.bf16.mxu1 %v1065_v8  ;;  %v1070_v17 = vld [vmem:[#allocation7 + $0x30] sm:$0xff]   ;;  %v1325_v18 = vld [vmem:[#allocation2 + $0x18] sm:$0xff]   ;;  %v1327_v19 = vld [vmem:[#allocation2 + $0x20] sm:$0xff]  }
  0x50   :  { %915 = vmatprep.subr.bf16.mxu0 %v1050_v2  ;;  %v1331_v20 = vld [vmem:[#allocation2 + $0x28] sm:$0xff]   ;;  %v1333_v21 = vld [vmem:[#allocation2 + $0x30] sm:$0xff]   ;;  %v1337_v22 = vld [vmem:[#allocation2 + $0x38] sm:$0xff]  }
  0x51   :  { %v1071_v23 = vld [vmem:[#allocation7 + $0x38] sm:$0xff]   ;;  %v1072_v24 = vld [vmem:[#allocation8] sm:$0xff]   ;;  %v1073_v25 = vld [vmem:[#allocation8 + $0x8] sm:$0xff]  }
  0x52   :  { %946 = vmatpush3.bf16.msra.mxu1 %v1065_v8  ;;  %v1074_v26 = vld [vmem:[#allocation8 + $0x10] sm:$0xff]   ;;  %v1075_v27 = vld [vmem:[#allocation8 + $0x18] sm:$0xff]   ;;  %v1076_v28 = vld [vmem:[#allocation8 + $0x20] sm:$0xff]  }
  0x53   :  { %916 = vmatpush3.bf16.msra.mxu0 %v1050_v2  ;;  %947 = vmatprep.subr.bf16.mxu1 %v1066_v10  ;;  %v1077_v29 = vld [vmem:[#allocation8 + $0x28] sm:$0xff]   ;;  %v1078_v54 = vld [vmem:[#allocation8 + $0x30] sm:$0xff]   ;;  %v1079_v55 = vld [vmem:[#allocation8 + $0x38] sm:$0xff]  }
  0x54   :  { %917 = vmatprep.subr.bf16.mxu0 %v1051_v3  ;;  %v829_v56 = vld [vmem:[%s1369_s3] ss:$0 sm:$0xff] }
  0x56   :  { %948 = vmatpush3.bf16.msra.mxu1 %v1066_v10 }
  0x57   :  { %918 = vmatpush3.bf16.msra.mxu0 %v1051_v3  ;;  %949 = vmatprep.subr.bf16.mxu1 %v1067_v12 }
  0x58   :  { %919 = vmatprep.subr.bf16.mxu0 %v1052_v5 }
  0x5a   :  { %950 = vmatpush3.bf16.msra.mxu1 %v1067_v12 }
  0x5b   :  { %920 = vmatpush3.bf16.msra.mxu0 %v1052_v5  ;;  %951 = vmatprep.subr.bf16.mxu1 %v1068_v13 }
  0x5c   :  { %921 = vmatprep.subr.bf16.mxu0 %v1053_v6 }
  0x5e   :  { %952 = vmatpush3.bf16.msra.mxu1 %v1068_v13 }
  0x5f   :  { %922 = vmatpush3.bf16.msra.mxu0 %v1053_v6  ;;  %953 = vmatprep.subr.bf16.mxu1 %v1069_v16 }
  0x60   :  { %923 = vmatprep.subr.bf16.mxu0 %v1054_v9 }
  0x62   :  { %954 = vmatpush3.bf16.msra.mxu1 %v1069_v16 }
  0x63   :  { %924 = vmatpush3.bf16.msra.mxu0 %v1054_v9  ;;  %955 = vmatprep.subr.bf16.mxu1 %v1070_v17 }
  0x64   :  { %925 = vmatprep.subr.bf16.mxu0 %v1055_v11 }
  0x66   :  { %956 = vmatpush3.bf16.msra.mxu1 %v1070_v17 }
  0x67   :  { %926 = vmatpush3.bf16.msra.mxu0 %v1055_v11  ;;  %957 = vmatprep.subr.bf16.mxu1 %v1071_v23 }
  0x68   :  { %975 = vmatprep.subr.bf16.mxu0 %v1072_v24 }
  0x6a   :  { %928 = vmatmul.mubr.bf16.vlgmr.msra.gmra.mrb[0].mxu0 %v1319_v14  ;;  %958 = vmatpush3.bf16.msra.mxu1 %v1071_v23 }
  0x6b   :  { %931 = vmatprep.mubr.bf16.mxu0 %v1321_v15  ;;  %976 = vmatpush3.bf16.msra.mxu0 %v1072_v24 }
  0x6c   :  { %977 = vmatprep.subr.bf16.mxu0 %v1073_v25 }
  0x6f   :  { %978 = vmatpush3.bf16.msra.mxu0 %v1073_v25 }
  0x70   :  { %979 = vmatprep.subr.bf16.mxu0 %v1074_v26 }
  0x72   :  { %932 = vmatmul.mubr.bf16.gmra.mrb[4].mxu0 %v1325_v18 }
  0x73   :  { %935 = vmatprep.mubr.bf16.mxu0 %v1327_v19  ;;  %980 = vmatpush3.bf16.msra.mxu0 %v1074_v26 }
  0x74   :  { %981 = vmatprep.subr.bf16.mxu0 %v1075_v27 }
  0x77   :  { %982 = vmatpush3.bf16.msra.mxu0 %v1075_v27 }
  0x78   :  { %983 = vmatprep.subr.bf16.mxu0 %v1076_v28 }
  0x7a   :  { %936 = vmatmul.mubr.bf16.gmra.mrb[8].mxu0 %v1331_v20 }
  0x7b   :  { %939 = vmatprep.mubr.bf16.mxu0 %v1333_v21  ;;  %984 = vmatpush3.bf16.msra.mxu0 %v1076_v28 }
  0x7c   :  { %985 = vmatprep.subr.bf16.mxu0 %v1077_v29 }
  0x7f   :  { %986 = vmatpush3.bf16.msra.mxu0 %v1077_v29 }
  0x80   :  { %987 = vmatprep.subr.bf16.mxu0 %v1078_v54 }
  0x82   :  { %940 = vmatmul.mubr.bf16.gmra.mrb[12].mxu0 %v1337_v22 }
  0x83   :  { %988 = vmatpush3.bf16.msra.mxu0 %v1078_v54 }
  0x84   :  { %989 = vmatprep.subr.bf16.mxu0 %v1079_v55 }
  0x87   :  { %990 = vmatpush3.bf16.msra.mxu0 %v1079_v55 }
 0x13d   :  { %v929_v30 = vpop.f32.mrb[0].mxu0 }
 0x13e   :  { %v275_v31 = vpop.f32.mrb[1].mxu0 }
 0x13f   :  { %v930_v32 = vpop.f32.mrb[2].mxu0 }
 0x140   :  { %v339_v33 = vpack.c.bf16 %v930_v32, %v929_v30  ;;  %v278_v34 = vpop.f32.mrb[3].mxu0 }
 0x141   :  { %v338_v35 = vpack.c.bf16 %v278_v34, %v275_v31 }
 0x143   :  { %959 = vmatprep.mubr.bf16.mxu1 %v338_v35 }
 0x144   :  { %960 = vmatmul.mubr.bf16.vlgmr.msra.gmra.mrb[0].mxu1 %v339_v33 }
 0x145   :  { %v933_v36 = vpop.f32.mrb[4].mxu0 }
 0x146   :  { %v291_v37 = vpop.f32.mrb[5].mxu0 }
 0x147   :  { %v934_v38 = vpop.f32.mrb[6].mxu0 }
 0x148   :  { %v341_v39 = vpack.c.bf16 %v934_v38, %v933_v36  ;;  %v294_v40 = vpop.f32.mrb[7].mxu0 }
 0x149   :  { %v340_v41 = vpack.c.bf16 %v294_v40, %v291_v37 }
 0x14b   :  { %963 = vmatprep.mubr.bf16.mxu1 %v340_v41 }
 0x14c   :  { %964 = vmatmul.mubr.bf16.gmra.mrb[4].mxu1 %v341_v39 }
 0x14d   :  { %v937_v42 = vpop.f32.mrb[8].mxu0 }
 0x14e   :  { %v307_v43 = vpop.f32.mrb[9].mxu0 }
 0x14f   :  { %v938_v44 = vpop.f32.mrb[10].mxu0 }
 0x150   :  { %v343_v45 = vpack.c.bf16 %v938_v44, %v937_v42  ;;  %v310_v46 = vpop.f32.mrb[11].mxu0 }
 0x151   :  { %v342_v47 = vpack.c.bf16 %v310_v46, %v307_v43 }
 0x153   :  { %967 = vmatprep.mubr.bf16.mxu1 %v342_v47 }
 0x154   :  { %968 = vmatmul.mubr.bf16.gmra.mrb[8].mxu1 %v343_v45 }
 0x155   :  { %v941_v48 = vpop.f32.mrb[12].mxu0 }
 0x156   :  { %v323_v49 = vpop.f32.mrb[13].mxu0 }
 0x157   :  { %v942_v50 = vpop.f32.mrb[14].mxu0 }
 0x158   :  { %v345_v51 = vpack.c.bf16 %v942_v50, %v941_v48  ;;  %v326_v52 = vpop.f32.mrb[15].mxu0 }
 0x159   :  { %v344_v53 = vpack.c.bf16 %v326_v52, %v323_v49 }
 0x15b   :  { %971 = vmatprep.mubr.bf16.mxu1 %v344_v53 }
 0x15c   :  { %972 = vmatmul.mubr.bf16.gmra.mrb[12].mxu1 %v345_v51 }
 0x15d   :  { %1023 = vmatprep.mubr.bf16.mxu1 %v1316_v4 }
 0x217   :  { %v961_v57 = vpop.f32.mrb[0].mxu1 }
 0x218   :  { %v443_v58 = vadd.f32 %v961_v57, %v829_v56  ;;  %v434_v59 = vpop.f32.mrb[1].mxu1 }
 0x219   :  { %v435_v60 = vadd.f32 %v829_v56, %v434_v59  ;;  %v962_v61 = vpop.f32.mrb[2].mxu1 }
 0x21a   :  { %v446_v62 = vadd.f32 %v962_v61, %v829_v56  ;;  %v437_v63 = vpop.f32.mrb[3].mxu1  ;;  %v499_v1 = vmax.f32 %v443_v58, 0.0 }
 0x21b   :  { %v438_v0 = vadd.f32 %v829_v56, %v437_v63  ;;  %v497_v3 = vmax.f32 %v435_v60, 0.0 }
 0x21c   :  { %v500_v2 = vmax.f32 %v446_v62, 0.0 }
 0x21d   :  { %v498_v4 = vmax.f32 %v438_v0, 0.0 }
 0x21e   :  { %v514_v5 = vpack.c.bf16 %v500_v2, %v499_v1 }
 0x21f   :  { %v513_v6 = vpack.c.bf16 %v498_v4, %v497_v3  ;;  %v965_v7 = vpop.f32.mrb[4].mxu1 }
 0x220   :  { %v459_v8 = vadd.f32 %v965_v7, %v829_v56  ;;  %v450_v9 = vpop.f32.mrb[5].mxu1 }
 0x221   :  { %v451_v10 = vadd.f32 %v829_v56, %v450_v9  ;;  %v966_v11 = vpop.f32.mrb[6].mxu1  ;;  %991 = vmatprep.mubr.bf16.mxu0 %v513_v6 }
 0x222   :  { %v462_v12 = vadd.f32 %v966_v11, %v829_v56  ;;  %v453_v13 = vpop.f32.mrb[7].mxu1  ;;  %992 = vmatmul.mubr.bf16.vlgmr.msra.gmra.mrb[16].mxu0 %v514_v5  ;;  %v503_v17 = vmax.f32 %v459_v8, 0.0 }
 0x223   :  { %v454_v16 = vadd.f32 %v829_v56, %v453_v13  ;;  %v501_v24 = vmax.f32 %v451_v10, 0.0 }
 0x224   :  { %v504_v23 = vmax.f32 %v462_v12, 0.0 }
 0x225   :  { %v502_v25 = vmax.f32 %v454_v16, 0.0 }
 0x226   :  { %v516_v26 = vpack.c.bf16 %v504_v23, %v503_v17  ;;  %v846_v23 = vld [vmem:[%s1371_s5] ss:$0 sm:$0xff]  ;;  %s1204_s5 = smov [#allocation10]  }
 0x227   :  { %v515_v27 = vpack.c.bf16 %v502_v25, %v501_v24  ;;  %v969_v28 = vpop.f32.mrb[8].mxu1  ;;  %s799_s21 = sshll.u32 %s1204_s5, 4  ;;  %s800_s21 = int_to_ptr.vmem [resolvable:$true] %s799_s21 }
 0x228   :  { %v475_v29 = vadd.f32 %v969_v28, %v829_v56  ;;  %v466_v30 = vpop.f32.mrb[9].mxu1  ;;  %s1168_s22 = scalar_lea.vmem %s800_s21, 2048  ;;  %p1173_p5 = scmp.lt.s32.totalorder %s800_s21, %s800_s21 }
 0x229   :  { %v467_v31 = vadd.f32 %v829_v56, %v466_v30  ;;  %v970_v32 = vpop.f32.mrb[10].mxu1  ;;  %995 = vmatprep.mubr.bf16.mxu0 %v515_v27  ;;  %p1169_p4 = scmp.ne.s32.totalorder %s800_s21, %s1168_s22  ;;  %p1174_p6 = scmp.lt.s32.totalorder %s1168_s22, %s1168_s22 }
 0x22a   :  { %v478_v33 = vadd.f32 %v970_v32, %v829_v56  ;;  %v469_v34 = vpop.f32.mrb[11].mxu1  ;;  %996 = vmatmul.mubr.bf16.gmra.mrb[20].mxu0 %v516_v26  ;;  %v507_v36 = vmax.f32 %v475_v29, 0.0 }
 0x22b   :  { %v470_v35 = vadd.f32 %v829_v56, %v469_v34  ;;  %v505_v38 = vmax.f32 %v467_v31, 0.0  ;;  %p1175_p7 = por %p1174_p6, %p1173_p5 }
 0x22c   :  { %v508_v37 = vmax.f32 %v478_v33, 0.0 }
 0x22d   :  { %v506_v39 = vmax.f32 %v470_v35, 0.0  ;;  %p1176_p8 = pnand %p1175_p7, %p1169_p4 }
 0x22e   :  { %v518_v40 = vpack.c.bf16 %v508_v37, %v507_v36 }
 0x22f   :  { %v517_v41 = vpack.c.bf16 %v506_v39, %v505_v38  ;;  %v973_v42 = vpop.f32.mrb[12].mxu1 }
 0x230   :  { %v491_v43 = vadd.f32 %v973_v42, %v829_v56  ;;  %v482_v44 = vpop.f32.mrb[13].mxu1 }
 0x231   :  { %v483_v45 = vadd.f32 %v829_v56, %v482_v44  ;;  %v974_v46 = vpop.f32.mrb[14].mxu1  ;;  %999 = vmatprep.mubr.bf16.mxu0 %v517_v41 }
 0x232   :  { %v494_v47 = vadd.f32 %v974_v46, %v829_v56  ;;  %v485_v48 = vpop.f32.mrb[15].mxu1  ;;  %1000 = vmatmul.mubr.bf16.gmra.mrb[24].mxu0 %v518_v40  ;;  %v511_v50 = vmax.f32 %v491_v43, 0.0 }
 0x233   :  { %v486_v49 = vadd.f32 %v829_v56, %v485_v48  ;;  %v509_v52 = vmax.f32 %v483_v45, 0.0 }
 0x234   :  { %v512_v51 = vmax.f32 %v494_v47, 0.0 }
 0x235   :  { %v510_v53 = vmax.f32 %v486_v49, 0.0 }
 0x236   :  { %v520_v54 = vpack.c.bf16 %v512_v51, %v511_v50 }
 0x237   :  { %v519_v55 = vpack.c.bf16 %v510_v53, %v509_v52 }
 0x239   :  { %1003 = vmatprep.mubr.bf16.mxu0 %v519_v55 }
 0x23a   :  { %1004 = vmatmul.mubr.bf16.gmra.mrb[28].mxu0 %v520_v54 }
 0x2f5   :  { %v993_v57 = vpop.f32.mrb[16].mxu0 }
 0x2f6   :  { %v604_v58 = vpop.f32.mrb[17].mxu0 }
 0x2f7   :  { %v994_v59 = vpop.f32.mrb[18].mxu0 }
 0x2f8   :  { %v668_v60 = vpack.c.bf16 %v994_v59, %v993_v57  ;;  %v607_v61 = vpop.f32.mrb[19].mxu0 }
 0x2f9   :  { %v667_v62 = vpack.c.bf16 %v607_v61, %v604_v58 }
 0x2fb   :  { %1007 = vmatprep.subr.bf16.mxu1 %v667_v62 }
 0x2fc   :  { %1008 = vmatpush3.bf16.msra.mxu1 %v667_v62 }
 0x2fd   :  { %v997_v63 = vpop.f32.mrb[20].mxu0  ;;  %1009 = vmatprep.subr.bf16.mxu1 %v668_v60 }
 0x2fe   :  { %v620_v0 = vpop.f32.mrb[21].mxu0 }
 0x2ff   :  { %v998_v56 = vpop.f32.mrb[22].mxu0 }
 0x300   :  { %v670_v1 = vpack.c.bf16 %v998_v56, %v997_v63  ;;  %v623_v2 = vpop.f32.mrb[23].mxu0  ;;  %1010 = vmatpush3.bf16.msra.mxu1 %v668_v60 }
 0x301   :  { %v669_v3 = vpack.c.bf16 %v623_v2, %v620_v0 }
 0x303   :  { %1011 = vmatprep.subr.bf16.mxu1 %v669_v3 }
 0x304   :  { %1012 = vmatpush3.bf16.msra.mxu1 %v669_v3 }
 0x305   :  { %v1001_v4 = vpop.f32.mrb[24].mxu0  ;;  %1013 = vmatprep.subr.bf16.mxu1 %v670_v1 }
 0x306   :  { %v636_v5 = vpop.f32.mrb[25].mxu0 }
 0x307   :  { %v1002_v6 = vpop.f32.mrb[26].mxu0 }
 0x308   :  { %v672_v7 = vpack.c.bf16 %v1002_v6, %v1001_v4  ;;  %v639_v8 = vpop.f32.mrb[27].mxu0  ;;  %1014 = vmatpush3.bf16.msra.mxu1 %v670_v1 }
 0x309   :  { %v671_v9 = vpack.c.bf16 %v639_v8, %v636_v5 }
 0x30b   :  { %1015 = vmatprep.subr.bf16.mxu1 %v671_v9 }
 0x30c   :  { %1016 = vmatpush3.bf16.msra.mxu1 %v671_v9 }
 0x30d   :  { %v1005_v10 = vpop.f32.mrb[28].mxu0  ;;  %1017 = vmatprep.subr.bf16.mxu1 %v672_v7 }
 0x30e   :  { %v652_v11 = vpop.f32.mrb[29].mxu0 }
 0x30f   :  { %v1006_v12 = vpop.f32.mrb[30].mxu0 }
 0x310   :  { %v674_v13 = vpack.c.bf16 %v1006_v12, %v1005_v10  ;;  %v655_v16 = vpop.f32.mrb[31].mxu0  ;;  %1018 = vmatpush3.bf16.msra.mxu1 %v672_v7 }
 0x311   :  { %v673_v17 = vpack.c.bf16 %v655_v16, %v652_v11 }
 0x313   :  { %1019 = vmatprep.subr.bf16.mxu1 %v673_v17 }
 0x314   :  { %1020 = vmatpush3.bf16.msra.mxu1 %v673_v17 }
 0x315   :  { %1021 = vmatprep.subr.bf16.mxu1 %v674_v13 }
 0x318   :  { %1022 = vmatpush3.bf16.msra.mxu1 %v674_v13 }
 0x31b   :  { %1024 = vmatmul.mubr.bf16.vlgmr.msra.gmra.mrb[16].mxu1 %v1319_v14 }
 0x31c   :  { %1027 = vmatprep.mubr.bf16.mxu1 %v1321_v15 }
 0x323   :  { %1028 = vmatmul.mubr.bf16.gmra.mrb[20].mxu1 %v1325_v18 }
 0x324   :  { %1031 = vmatprep.mubr.bf16.mxu1 %v1327_v19 }
 0x32b   :  { %1032 = vmatmul.mubr.bf16.gmra.mrb[24].mxu1 %v1331_v20 }
 0x32c   :  { %1035 = vmatprep.mubr.bf16.mxu1 %v1333_v21 }
 0x333   :  { %1036 = vmatmul.mubr.bf16.gmra.mrb[28].mxu1 %v1337_v22 }
 0x3ee   :  { %v1025_v24 = vpop.f32.mrb[16].mxu1 }
 0x3ef   :  { %v724_v25 = vadd.f32 %v1025_v24, %v846_v23  ;;  %v715_v26 = vpop.f32.mrb[17].mxu1 }
 0x3f0   :  { %v716_v14 = vadd.f32 %v846_v23, %v715_v26  ;;  %v1026_v27 = vpop.f32.mrb[18].mxu1 }
 0x3f1   :  { %780 = vst [vmem:[#allocation10 + $0x10] sm:$0xff] %v724_v25  ;;  %v727_v15 = vadd.f32 %v1026_v27, %v846_v23  ;;  %v718_v18 = vpop.f32.mrb[19].mxu1 }
 0x3f2   :  { %778 = vst [vmem:[#allocation10] sm:$0xff] %v716_v14  ;;  %v719_v19 = vadd.f32 %v846_v23, %v718_v18 }
 0x3f3   :  { %781 = vst [vmem:[#allocation10 + $0x18] sm:$0xff] %v727_v15 }
 0x3f4   :  { %779 = vst [vmem:[#allocation10 + $0x8] sm:$0xff] %v719_v19 }
 0x3f6   :  { %v1029_v20 = vpop.f32.mrb[20].mxu1 }
 0x3f7   :  { %v740_v21 = vadd.f32 %v1029_v20, %v846_v23  ;;  %v731_v28 = vpop.f32.mrb[21].mxu1 }
 0x3f8   :  { %v732_v22 = vadd.f32 %v846_v23, %v731_v28  ;;  %v1030_v29 = vpop.f32.mrb[22].mxu1 }
 0x3f9   :  { %784 = vst [vmem:[#allocation10 + $0x30] sm:$0xff] %v740_v21  ;;  %v743_v30 = vadd.f32 %v1030_v29, %v846_v23  ;;  %v734_v31 = vpop.f32.mrb[23].mxu1 }
 0x3fa   :  { %782 = vst [vmem:[#allocation10 + $0x20] sm:$0xff] %v732_v22  ;;  %v735_v32 = vadd.f32 %v846_v23, %v734_v31 }
 0x3fb   :  { %785 = vst [vmem:[#allocation10 + $0x38] sm:$0xff] %v743_v30 }
 0x3fc   :  { %783 = vst [vmem:[#allocation10 + $0x28] sm:$0xff] %v735_v32 }
 0x3fe   :  { %v1033_v33 = vpop.f32.mrb[24].mxu1 }
 0x3ff   :  { %v756_v34 = vadd.f32 %v1033_v33, %v846_v23  ;;  %v747_v35 = vpop.f32.mrb[25].mxu1 }
 0x400   :  { %v748_v36 = vadd.f32 %v846_v23, %v747_v35  ;;  %v1034_v37 = vpop.f32.mrb[26].mxu1 }
 0x401   :  { %788 = vst [vmem:[#allocation10 + $0x50] sm:$0xff] %v756_v34  ;;  %v759_v38 = vadd.f32 %v1034_v37, %v846_v23  ;;  %v750_v39 = vpop.f32.mrb[27].mxu1 }
 0x402   :  { %786 = vst [vmem:[#allocation10 + $0x40] sm:$0xff] %v748_v36  ;;  %v751_v40 = vadd.f32 %v846_v23, %v750_v39 }
 0x403   :  { %789 = vst [vmem:[#allocation10 + $0x58] sm:$0xff] %v759_v38 }
 0x404   :  { %787 = vst [vmem:[#allocation10 + $0x48] sm:$0xff] %v751_v40 }
 0x406   :  { %v1037_v41 = vpop.f32.mrb[28].mxu1 }
 0x407   :  { %v772_v42 = vadd.f32 %v1037_v41, %v846_v23  ;;  %v763_v43 = vpop.f32.mrb[29].mxu1 }
 0x408   :  { %v764_v44 = vadd.f32 %v846_v23, %v763_v43  ;;  %v1038_v45 = vpop.f32.mrb[30].mxu1 }
 0x409   :  { %792 = vst [vmem:[#allocation10 + $0x70] sm:$0xff] %v772_v42  ;;  %v775_v46 = vadd.f32 %v1038_v45, %v846_v23  ;;  %v766_v47 = vpop.f32.mrb[31].mxu1 }
 0x40a   :  { %790 = vst [vmem:[#allocation10 + $0x60] sm:$0xff] %v764_v44  ;;  %v767_v48 = vadd.f32 %v846_v23, %v766_v47 }
 0x40b   :  { %793 = vst [vmem:[#allocation10 + $0x78] sm:$0xff] %v775_v46 }
 0x40c   :  { %791 = vst [vmem:[#allocation10 + $0x68] sm:$0xff] %v767_v48 }
 0x40d   :  { %1179 = shalt.err (!%p1176_p8)
}
 0x40e   :  { %s1180_s26 = scalar_lea.hbm %s1372_s6, 2048 }
 0x40f   :  { %p1181_p9 = scmp.ne.s32.totalorder %s1372_s6, %s1180_s26  ;;  %p1184_p10 = scmp.lt.u32.totalorder %s1180_s26, %s1372_s6 }
 0x411   :  { %p1186_p11 = pnand %p1184_p10, %p1181_p9 }
 0x413   :  { %1189 = shalt.err (!%p1186_p11)
}
 0x414   :  { %s1205_s7 = smov 128   ;;  %s1206_s8 = smov 8  }
 0x415   :  { %805 = dma.vmem_to_hbm [thread:$0]  %s800_s21, 2048, %s1372_s6, [#allocation4], %s1205_s7, %s1205_s7, %s1206_s8  }
 0x416   :  { %1196 = dma.done.wait [#allocation4], 2048  }
 0x417   :  { %1197 = vsyncadd [#allocation4], 4294965248 }
 0x418   :  { %809 = vsyncpa [#allocation3], 1 }
 0x419   :  { %810 = vsyncpa [#allocation6], 1 }
 0x41a   :  { %811 = vsyncpa [#allocation9], 1 }
 0x41b   :  { %812 = vsyncpa [#allocation4], 1 }

</bundles_post_ra>
